<compile_context>
chip_gen: v7x
topology: tpu7x:2x2x1
jax: 0.10.0
libtpu: 0.0.40
codegen_flags: <defaults>
</compile_context>

<pallas_src>
import jax
import jax.numpy as jnp
from jax.experimental import pallas as pl
from jax.experimental.pallas import tpu as pltpu


def _cdiv(a: int, b: int) -> int:
    return (a + b - 1) // b


def _round_up(v: int, m: int) -> int:
    return ((v + m - 1) // m) * m


def _largest_dividing_tile(extent: int, target: int) -> int:
    """Largest multiple of 128 that divides `extent` (itself a 128-multiple)
    and is <= target.  Falls back to 128."""
    best = 128
    t = 256
    while t <= min(target, extent):
        if extent % t == 0:
            best = t
        t += 128
    return best


def _device_defaults():
    kind = ""
    try:
        kind = jax.devices()[0].device_kind.lower()
    except Exception:
        pass
    if "v7" in kind:
        # 64 MiB VMEM per TensorCore (scoped default 32), 3.2 TB/s HBM, 2 TCs.
        # ~80 flop/byte suffices for f32; keep working set well under 48 MiB.
        return dict(tm=512, tn=512, tk=1024, vmem=48 * 1024 * 1024, cores=2)
    if "v6" in kind:
        # 128 MiB VMEM, 1.4 TB/s HBM: f32 needs ~160+ flop/byte -> big tiles.
        return dict(tm=512, tn=512, tk=1024, vmem=64 * 1024 * 1024, cores=1)
    if "v5e" in kind or "v5 lite" in kind or "v5lite" in kind:
        # f32 roofline crossover ~60 flop/byte: 256 tiles are near compute
        # bound; spend VMEM on a deep K tile (fewer ~0.35us grid steps).
        return dict(tm=256, tn=256, tk=1024, vmem=40 * 1024 * 1024, cores=1)
    # Unknown part (v4 / v5p / interpret): conservative tiles, default VMEM.
    return dict(tm=256, tn=256, tk=512, vmem=None, cores=2)


# --------------------------------------------------------------------------
# Kernels
# --------------------------------------------------------------------------
def _linear_kernel_inplace(x_ref, w_ref, b_ref, o_ref):
    """f32 output: accumulate directly into the output block (resident in VMEM
    across the K 'arbitrary' axis).  Bias seeds the accumulator at k==0, so
    there is no finalize add/copy and no (tm, tn) scratch buffer."""
    @pl.when(pl.program_id(2) == 0)
    def _init():
        o_ref[...] = jnp.broadcast_to(b_ref[...], o_ref.shape).astype(o_ref.dtype)

    o_ref[...] += jnp.dot(x_ref[...], w_ref[...],
                          preferred_element_type=jnp.float32)


def _linear_kernel_scratch(x_ref, w_ref, b_ref, o_ref, acc_ref):
    """Non-f32 outputs: f32 VMEM accumulator, cast once at the last K step."""
    k = pl.program_id(2)

    @pl.when(k == 0)
    def _init():
        acc_ref[...] = jnp.broadcast_to(b_ref[...], acc_ref.shape)

    acc_ref[...] += jnp.dot(x_ref[...], w_ref[...],
                            preferred_element_type=jnp.float32)

    @pl.when(k == pl.num_programs(2) - 1)
    def _finalize():
        o_ref[...] = acc_ref[...].astype(o_ref.dtype)


# --------------------------------------------------------------------------
# Builder
# --------------------------------------------------------------------------
def make_linear(weight, bias, *, tm_target=None, tn_target=None,
                tk_target=None, use_bf16=False, vmem_limit_bytes=None):
    """Build a forward fn for PyTorch-layout params (weight [out,in], bias [out])."""
    weight = jnp.asarray(weight)
    bias = jnp.asarray(bias)
    out_features, in_features = weight.shape
    assert bias.shape == (out_features,)

    dflt = _device_defaults()
    tm_target = dflt["tm"] if tm_target is None else tm_target
    tn_target = dflt["tn"] if tn_target is None else tn_target
    tk_target = dflt["tk"] if tk_target is None else tk_target
    if vmem_limit_bytes is None:
        vmem_limit_bytes = dflt["vmem"]
    cores = dflt["cores"]

    # ---- N axis (static) ----------------------------------------------
    np_full = _round_up(out_features, 128)
    if cores >= 2 and np_full >= 256:
        # Guarantee >= 2 parallel N blocks so both TensorCores of a megacore
        # part get work even at tiny batch sizes.
        tn_target = min(tn_target, 128 * _cdiv(np_full // 128, 2))
    if out_features <= tn_target:
        tn, n_pad = out_features, out_features        # full-dim block, no pad
    else:
        tn, n_pad = _largest_dividing_tile(np_full, tn_target), np_full
    grid_n = _cdiv(out_features, tn)

    # ---- K axis (static) ----------------------------------------------
    kp_full = _round_up(in_features, 128)
    if in_features <= tk_target:
        tk, k_pad = in_features, in_features          # full-dim block, no pad
    else:
        tk, k_pad = _largest_dividing_tile(kp_full, tk_target), kp_full
    grid_k = k_pad // tk

    # ---- one-time parameter prep: layout + padding + optional bf16 -----
    wt = weight.T                                      # [in, out] (MXU layout)
    if (k_pad, n_pad) != (in_features, out_features):
        wt = jnp.pad(wt, ((0, k_pad - in_features), (0, n_pad - out_features)))
    if use_bf16:
        wt = wt.astype(jnp.bfloat16)
    b2d = jnp.pad(bias.astype(jnp.float32),
                  (0, n_pad - out_features)).reshape(1, n_pad)

    def forward(x):
        m, k_in = x.shape
        assert k_in == in_features
        out_dtype = x.dtype

        # K-axis padding of x is the only wrapper-side copy that can trigger
        # (required for reduction correctness; never remove it).
        xp = x
        if k_pad != in_features:
            xp = jnp.pad(x, ((0, 0), (0, k_pad - in_features)))
        if use_bf16:
            xp = xp.astype(jnp.bfloat16)

        tm = m if m <= tm_target else tm_target
        grid_m = _cdiv(m, tm)
        grid = (grid_m, grid_n, grid_k)

        if out_dtype == jnp.float32:
            kernel, scratch = _linear_kernel_inplace, []
        else:
            kernel, scratch = _linear_kernel_scratch, [
                pltpu.VMEM((tm, tn), jnp.float32)]

        cost = pl.CostEstimate(
            flops=2 * m * out_features * in_features,
            transcendentals=0,
            bytes_accessed=(m * in_features * xp.dtype.itemsize
                            + k_pad * n_pad * wt.dtype.itemsize
                            + m * out_features * jnp.dtype(out_dtype).itemsize),
        )

        return pl.pallas_call(
            kernel,
            out_shape=jax.ShapeDtypeStruct((m, out_features), out_dtype),
            grid_spec=pltpu.PrefetchScalarGridSpec(
                num_scalar_prefetch=0,
                grid=grid,
                in_specs=[
                    pl.BlockSpec((tm, tk), lambda i, j, k: (i, k)),
                    # If a profile shows exposed weight DMA at small tm,
                    # deepen with pipeline_mode=pl.Buffered(3).
                    pl.BlockSpec((tk, tn), lambda i, j, k: (k, j)),
                    pl.BlockSpec((1, tn), lambda i, j, k: (0, j)),
                ],
                out_specs=pl.BlockSpec((tm, tn), lambda i, j, k: (i, j)),
                scratch_shapes=scratch,
            ),
            compiler_params=pltpu.CompilerParams(
                # M/N shard across TensorCores; K is the sequential reduction.
                dimension_semantics=("parallel", "parallel", "arbitrary"),
                vmem_limit_bytes=vmem_limit_bytes,
            ),
            cost_estimate=cost,
        )(xp, wt, b2d)

    return jax.jit(forward)


if __name__ == "__main__":
    key = jax.random.PRNGKey(0)

    # --- Module config from the spec: Linear(in_features=32, out_features=64) ---
    in_features, out_features, bsz = 32, 64, 8
    kx, kw, kb = jax.random.split(key, 3)

    x = jax.random.normal(kx, (bsz, in_features), dtype=jnp.float32)
    bound = 1.0 / (in_features ** 0.5)
    weight = jax.random.uniform(kw, (out_features, in_features), dtype=jnp.float32,
                                minval=-bound, maxval=bound)
    bias = jax.random.uniform(kb, (out_features,), dtype=jnp.float32,
                              minval=-bound, maxval=bound)

    linear = make_linear(weight, bias)
    out = linear(x)
    jax.block_until_ready(out)
    ref = x @ weight.T + bias
    assert out.shape == (bsz, out_features)
    assert jnp.allclose(out, ref, atol=1e-5, rtol=1e-5)

    # --- Tiled / ragged path: multi-step K accumulation plus partial last
    #     M and N blocks handled inside the pipeline (no wrapper pad/slice). ---
    in2, out2, bsz2 = 384, 320, 200
    k2x, k2w, k2b = jax.random.split(jax.random.PRNGKey(1), 3)
    x2 = jax.random.normal(k2x, (bsz2, in2), dtype=jnp.float32)
    bound2 = 1.0 / (in2 ** 0.5)
    w2 = jax.random.uniform(k2w, (out2, in2), dtype=jnp.float32,
                            minval=-bound2, maxval=bound2)
    b2 = jax.random.uniform(k2b, (out2,), dtype=jnp.float32,
                            minval=-bound2, maxval=bound2)

    linear2 = make_linear(w2, b2, tm_target=128, tn_target=128, tk_target=128)
    out2_v = linear2(x2)
    jax.block_until_ready(out2_v)
    ref2 = x2 @ w2.T + b2
    assert out2_v.shape == (bsz2, out2)
    assert jnp.allclose(out2_v, ref2, atol=1e-4, rtol=1e-4)

    # --- bf16 MXU path (largest compute win on v6e/v7x): bf16 operands with
    #     f32 accumulation and f32 output; relaxed tolerance per bf16 rounding. ---
    linear3 = make_linear(w2, b2, use_bf16=True)
    out3_v = linear3(x2)
    jax.block_until_ready(out3_v)
    assert out3_v.shape == (bsz2, out2)
    assert jnp.allclose(out3_v, ref2, atol=5e-2, rtol=5e-2)

    print("KERNEL_OK")
</pallas_src>

<mosaic_0001>
module attributes {stable_mosaic.version = 11 : i64} {
  func.func @_linear_kernel_inplace(%arg0: i32, %arg1: i32, %arg2: i32, %arg3: memref<8x32xf32, #tpu.memory_space<vmem>>, %arg4: memref<32x64xf32, #tpu.memory_space<vmem>>, %arg5: memref<1x64xf32, #tpu.memory_space<vmem>>, %arg6: memref<8x64xf32, #tpu.memory_space<vmem>>) attributes {dimension_semantics = [#tpu.dimension_semantics<parallel>, #tpu.dimension_semantics<parallel>, #tpu.dimension_semantics<arbitrary>], iteration_bounds = array<i64: 1, 1, 1>, scalar_prefetch = 0 : i64, scratch_operands = 0 : i64, tpu.core_type = #tpu.core_type<tc>, window_params = [{transform_indices = @transform_0, window_bounds = array<i64: 8, 32>}, {transform_indices = @transform_1, window_bounds = array<i64: 32, 64>}, {transform_indices = @transform_2, window_bounds = array<i64: 1, 64>}, {transform_indices = @transform_3, window_bounds = array<i64: 8, 64>}]} {
    %c0_i32 = arith.constant 0 : i32
    %0 = arith.cmpi eq, %arg2, %c0_i32 : i32
    %1 = arith.extui %0 : i1 to i32
    %c0_i32_0 = arith.constant 0 : i32
    %2 = arith.cmpi ne, %1, %c0_i32_0 : i32
    scf.if %2 {
      %c0_8 = arith.constant 0 : index
      %c0_9 = arith.constant 0 : index
      %9 = vector.load %arg5[%c0_8, %c0_9] : memref<1x64xf32, #tpu.memory_space<vmem>>, vector<1x64xf32>
      %10 = vector.shape_cast %9 : vector<1x64xf32> to vector<1x64xf32>
      %11 = vector.broadcast %10 : vector<1x64xf32> to vector<8x64xf32>
      %c0_10 = arith.constant 0 : index
      %c0_11 = arith.constant 0 : index
      %12 = vector.load %arg6[%c0_10, %c0_11] : memref<8x64xf32, #tpu.memory_space<vmem>>, vector<8x64xf32>
      tpu.vector_store %arg6[%c0_10, %c0_11], %11 {strides = array<i32>} : memref<8x64xf32, #tpu.memory_space<vmem>>, vector<8x64xf32>,
    } else {
    }
    %c0 = arith.constant 0 : index
    %c0_1 = arith.constant 0 : index
    %3 = vector.load %arg6[%c0, %c0_1] : memref<8x64xf32, #tpu.memory_space<vmem>>, vector<8x64xf32>
    %c0_2 = arith.constant 0 : index
    %c0_3 = arith.constant 0 : index
    %4 = vector.load %arg3[%c0_2, %c0_3] : memref<8x32xf32, #tpu.memory_space<vmem>>, vector<8x32xf32>
    %c0_4 = arith.constant 0 : index
    %c0_5 = arith.constant 0 : index
    %5 = vector.load %arg4[%c0_4, %c0_5] : memref<32x64xf32, #tpu.memory_space<vmem>>, vector<32x64xf32>
    %cst = arith.constant dense<0.000000e+00> : vector<8x64xf32>
    %6 = tpu.matmul %4, %5, %cst {dimension_numbers = #tpu.dot_dimension_numbers<[1], [0], [0], [1], [0, 0, 1, 1], [], []>} : vector<8x32xf32>, vector<32x64xf32>, vector<8x64xf32> -> vector<8x64xf32>
    %7 = arith.addf %3, %6 : vector<8x64xf32>
    %c0_6 = arith.constant 0 : index
    %c0_7 = arith.constant 0 : index
    %8 = vector.load %arg6[%c0_6, %c0_7] : memref<8x64xf32, #tpu.memory_space<vmem>>, vector<8x64xf32>
    tpu.vector_store %arg6[%c0_6, %c0_7], %7 {strides = array<i32>} : memref<8x64xf32, #tpu.memory_space<vmem>>, vector<8x64xf32>,
    return
  }
  func.func @transform_0(%arg0: i32, %arg1: i32, %arg2: i32) -> (i32, i32) {
    %c0_i32 = arith.constant 0 : i32
    return %arg0, %arg2 : i32, i32
  }
  func.func @transform_1(%arg0: i32, %arg1: i32, %arg2: i32) -> (i32, i32) {
    %c0_i32 = arith.constant 0 : i32
    return %arg2, %arg1 : i32, i32
  }
  func.func @transform_2(%arg0: i32, %arg1: i32, %arg2: i32) -> (i32, i32) {
    %c0_i32 = arith.constant 0 : i32
    %c0_i32_0 = arith.constant 0 : i32
    return %c0_i32, %arg1 : i32, i32
  }
  func.func @transform_3(%arg0: i32, %arg1: i32, %arg2: i32) -> (i32, i32) {
    %c0_i32 = arith.constant 0 : i32
    return %arg0, %arg1 : i32, i32
  }
}

</mosaic_0001>

<bundles_post_ra>
// kernel: forward.1
= control target key start
LH: loop header
LB: loop body
LE: loop exit
PB: predicated region body
PF: predicated region fallthrough
CT: control target
= control target key end

     0   :  { %8 = vsyncpa [#allocation3], 0  ;;  %s333_s0 = inlined_call_operand.hbm [shape: f32[8,32], index: 0, kind: input, shape index: {}]   ;;  %s334_s1 = inlined_call_operand.hbm [shape: f32[32,64], index: 1, kind: input, shape index: {}]   ;;  %s335_s2 = inlined_call_operand.vmem [shape: f32[1,64], index: 2, kind: input, shape index: {}]   ;;  %s336_s3 = inlined_call_operand.hbm [shape: f32[8,64], index: 3, kind: output, shape index: {}]  }
   0x1   :  { %9 = vsyncpa [#allocation6], 0 }
   0x2   :  { %10 = vsyncpa [#allocation4], 0  ;;  %s257_s12 = smov [#allocation2]   ;;  %s258_s14 = smov [#allocation5]  }
   0x3   :  { %s17_s13 = sshll.u32 %s257_s12, 4  ;;  %s26_s15 = sshll.u32 %s258_s14, 4  ;;  %s18_s13 = int_to_ptr.vmem [resolvable:$true] %s17_s13  ;;  %s285_s15 = int_to_ptr.vmem [resolvable:$true] %s26_s15 }
   0x4   :  { %s185_s18 = scalar_lea.hbm %s333_s0, 128 }
   0x5   :  { %p186_p0 = scmp.ne.s32.totalorder %s333_s0, %s185_s18  ;;  %p189_p1 = scmp.lt.u32.totalorder %s185_s18, %s333_s0 }
   0x7   :  { %p191_p2 = pnand %p189_p1, %p186_p0 }
   0x9   :  { %194 = shalt.err (!%p191_p2)
}
   0xa   :  { %s195_s23 = scalar_lea.vmem %s18_s13, 128  ;;  %p200_p4 = scmp.lt.s32.totalorder %s18_s13, %s18_s13 }
   0xb   :  { %p196_p3 = scmp.ne.s32.totalorder %s18_s13, %s195_s23  ;;  %p201_p5 = scmp.lt.s32.totalorder %s195_s23, %s195_s23 }
   0xd   :  { %p202_p6 = por %p201_p5, %p200_p4 }
   0xf   :  { %p203_p7 = pnand %p202_p6, %p196_p3 }
  0x11   :  { %206 = shalt.err (!%p203_p7)
}
  0x12   :  { %20 = dma.hbm_to_vmem [thread:$0]  %s333_s0, 128, %s18_s13, [#allocation3]  }
  0x13   :  { %s207_s28 = scalar_lea.hbm %s334_s1, 512 }
  0x14   :  { %p208_p8 = scmp.ne.s32.totalorder %s334_s1, %s207_s28  ;;  %p211_p9 = scmp.lt.u32.totalorder %s207_s28, %s334_s1 }
  0x16   :  { %p213_p10 = pnand %p211_p9, %p208_p8 }
  0x18   :  { %216 = shalt.err (!%p213_p10)
}
  0x19   :  { %s217_s6 = scalar_lea.vmem %s285_s15, 512  ;;  %p222_p12 = scmp.lt.s32.totalorder %s285_s15, %s285_s15 }
  0x1a   :  { %p218_p11 = scmp.ne.s32.totalorder %s285_s15, %s217_s6  ;;  %p223_p13 = scmp.lt.s32.totalorder %s217_s6, %s217_s6 }
  0x1c   :  { %p224_p0 = por %p223_p13, %p222_p12 }
  0x1e   :  { %p225_p1 = pnand %p224_p0, %p218_p11 }
  0x20   :  { %228 = shalt.err (!%p225_p1)
}
  0x21   :  { %s259_s0 = smov 128   ;;  %s260_s7 = smov 8  }
  0x22   :  { %32 = dma.hbm_to_vmem [thread:$0]  %s334_s1, 512, %s285_s15, [#allocation6], %s259_s0, %s259_s0, %s260_s7  }
  0x23   :  { %251 = dma.done.wait [#allocation3], 128  }
  0x24   :  { %252 = vsyncadd [#allocation3], 4294967168 }
  0x25   :  { %253 = dma.done.wait [#allocation6], 512  }
  0x26   :  { %254 = vsyncadd [#allocation6], 4294966784  ;;  %v261_v0 = vmov 0.0|0.0   ;;  %vm262_vm0 = vmmov 0   ;;  %v263_v1 = vmov 0.0   ;;  %vm52_vm1 = vcmask 523264  }
  0x27   :  { %171 = vmatprep.subr.bf16.mxu0 %v261_v0  ;;  %168 = vmatprep.mubr.msk.f32.mxu0 %vm262_vm0, %v263_v1  ;;  %v153_v2 = vld [vmem:[%s335_s2] ss:$0 sm:$0xff]  ;;  %v56_v3 = vld [vmem:[#allocation5] sm:$0xff]  ;;  %v57_v4 = vld [vmem:[#allocation5 + $0x8] sm:$0xff]  ;;  %vm60_vm2 = vcmask 261120   ;;  %s264_s1 = smov [#allocation7]  }
  0x28   :  { %53 = vst.msk [vmem:[#allocation7] sm:$0xff] %vm52_vm1, %v153_v2  ;;  %v172_v5 = vpack.c.bf16 %v57_v4, %v56_v3  ;;  %v58_v6 = vld [vmem:[#allocation5 + $0x10] sm:$0xff]  ;;  %v59_v7 = vld [vmem:[#allocation5 + $0x18] sm:$0xff]  ;;  %s143_s12 = sshll.u32 %s264_s1, 4  ;;  %s144_s12 = int_to_ptr.vmem [resolvable:$true] %s143_s12 }
  0x29   :  { %v175_v8 = vpack.c.bf16 %v59_v7, %v58_v6  ;;  %v55_v9 = vld [vmem:[#allocation2] sm:$0xff]  ;;  %s229_s2 = scalar_lea.vmem %s144_s12, 128  ;;  %p234_p3 = scmp.lt.s32.totalorder %s144_s12, %s144_s12 }
  0x2a   :  { %173 = vmatpush3.bf16.msra.mxu0 %v172_v5  ;;  %p230_p2 = scmp.ne.s32.totalorder %s144_s12, %s229_s2  ;;  %p235_p4 = scmp.lt.s32.totalorder %s229_s2, %s229_s2 }
  0x2b   :  { %174 = vmatprep.subr.bf16.mxu0 %v261_v0 }
  0x2c   :  { %p236_p5 = por %p235_p4, %p234_p3 }
  0x2e   :  { %176 = vmatpush3.bf16.msra.mxu0 %v175_v8  ;;  %p237_p6 = pnand %p236_p5, %p230_p2 }
  0x2f   :  { %v54_v10 = vld [vmem:[#allocation7] sm:$0xff] }
  0x31   :  { %169 = vmatmul.mubr.msk.f32.vlgmr.msra.gmra.mrb[0].mxu0 %vm60_vm2, %v55_v9 }
 0x104   :  { %v130_v11 = vpop.f32.mrb[0].mxu0 }
 0x105   :  { %v134_v12 = vadd.f32 %v130_v11, %v54_v10  ;;  %v170_v13 = vpop.f32.mrb[1].mxu0 }
 0x107   :  { %136 = vst.msk [vmem:[#allocation7] sm:$0xff] %vm52_vm1, %v134_v12 }
 0x108   :  { %240 = shalt.err (!%p237_p6)
}
 0x109   :  { %s241_s15 = scalar_lea.hbm %s336_s3, 128 }
 0x10a   :  { %p242_p7 = scmp.ne.s32.totalorder %s336_s3, %s241_s15  ;;  %p245_p8 = scmp.lt.u32.totalorder %s241_s15, %s336_s3 }
 0x10c   :  { %p247_p9 = pnand %p245_p8, %p242_p7 }
 0x10e   :  { %250 = shalt.err (!%p247_p9)
}
 0x10f   :  { %146 = dma.vmem_to_hbm [thread:$0]  %s144_s12, 128, %s336_s3, [#allocation4]  }
 0x110   :  { %255 = dma.done.wait [#allocation4], 128  }
 0x111   :  { %256 = vsyncadd [#allocation4], 4294967168 }
 0x112   :  { %150 = vsyncpa [#allocation3], 1 }
 0x113   :  { %151 = vsyncpa [#allocation6], 1 }
 0x114   :  { %152 = vsyncpa [#allocation4], 1 }

</bundles_post_ra>
